<compile_context>
chip_gen: v7x
topology: tpu7x:2x2x1
jax: 0.10.0
libtpu: 0.0.40
codegen_flags: <defaults>
</compile_context>

<pallas_src>
import functools

import jax
import jax.numpy as jnp
from jax.experimental import pallas as pl
from jax.experimental.pallas import tpu as pltpu


def _round_up(x, m):
    return (x + m - 1) // m * m


def _gru_dfa_kernel(gx_ref, w_zr_ref, w1_ref, w_out_ref, b_out_ref, out_ref,
                    h_ref, *, hp, time_chunk, t_actual, unroll, mxu_dtype):
    """Time-chunked GRU recurrence with a VMEM-resident hidden accumulator.

    Grid = (batch_blocks, time_chunks); time is the innermost ("arbitrary")
    axis, batch blocks are "parallel" (megacore-shardable on v7x).

    gx_ref   : (Tc, Bb, 3Hp)  input projections with gate biases folded in:
                              [x V2^T + b_W2 | x V3^T + b_W3 | x V1^T + b_V1]
    w_zr_ref : (Hp, 2Hp)      [W2^T | W3^T]            (mxu_dtype)
    w1_ref   : (Hp, Hp)       W1^T                     (mxu_dtype)
    w_out_ref: (Hp, Op)       Wout^T                   (mxu_dtype)
    b_out_ref: (1, Op)        b_out (padded lanes = -1e30 -> softmax prob 0)
    out_ref  : (Bb, Op)       softmax(Wout h_T + b_out)
    h_ref    : (Bb, Hp) f32   hidden-state accumulator, persists across chunks
    """
    t_chunk = pl.program_id(1)

    @pl.when(t_chunk == 0)
    def _init():
        h_ref[...] = jnp.zeros_like(h_ref)

    # Hoist resident weight loads out of the recurrent loop.
    w_zr = w_zr_ref[...]
    w1 = w1_ref[...]
    t0 = t_chunk * time_chunk

    def step(i, hidden):
        gx = gx_ref[i]                                          # (Bb, 3Hp)
        # Fused z/r pre-activation: one MXU push with N = 2Hp (biases already
        # folded into gx in the wrapper).
        pre_zr = (jnp.dot(hidden.astype(mxu_dtype), w_zr,
                          preferred_element_type=jnp.float32)
                  + gx[:, :2 * hp])
        z = jax.nn.sigmoid(pre_zr[:, :hp])
        r = jax.nn.sigmoid(pre_zr[:, hp:])
        # Candidate state: depends on (hidden * r), so it needs its own matmul.
        pre_h = (jnp.dot((hidden * r).astype(mxu_dtype), w1,
                         preferred_element_type=jnp.float32)
                 + gx[:, 2 * hp:])                              # b_V1 folded in
        h_tilde = jnp.tanh(pre_h)
        h_new = (1.0 - z) * h_tilde + z * hidden
        # Timesteps beyond the true sequence length (T padded up to a multiple
        # of the chunk size) are identity updates.
        return jnp.where(t0 + i < t_actual, h_new, hidden)

    h_ref[...] = jax.lax.fori_loop(0, time_chunk, step, h_ref[...],
                                   unroll=unroll)

    @pl.when(t_chunk == pl.num_programs(1) - 1)
    def _readout():
        hidden = h_ref[...]
        logits = (jnp.dot(hidden.astype(mxu_dtype), w_out_ref[...],
                          preferred_element_type=jnp.float32)
                  + b_out_ref[...])
        m = jnp.max(logits, axis=-1, keepdims=True)
        e = jnp.exp(logits - m)
        denom = jnp.sum(e, axis=-1, keepdims=True)
        # Exact reciprocal keeps the 1e-5 check; flip approx=True in prod.
        out_ref[...] = (e * pl.reciprocal(denom, approx=False)
                        ).astype(out_ref.dtype)


def gru_dfa_forward(x, w1_w, v1_w, v1_b, w2_w, w2_b, v2_w, w3_w, w3_b, v3_w,
                    wout_w, wout_b, *, time_chunk=16, batch_block=None,
                    mxu_dtype=jnp.float32, unroll=4):
    """x: (B, T, I) float32.  Returns softmax output (B, O) float32."""
    B, T, n_inp = x.shape
    H = w1_w.shape[0]
    O = wout_w.shape[0]
    f32 = jnp.float32

    # ---- padded, tile-aligned sizes (sliced back off at the end) ----------
    hp = _round_up(H, 128)                  # hidden -> lane/MXU aligned
    op = _round_up(O, 128)                  # lane-dense output store
    bp = _round_up(B, 8)                    # sublane aligned batch
    bb = bp if batch_block is None else batch_block
    bp = _round_up(bp, bb)
    nb = bp // bb
    tc = min(time_chunk, T)
    nt = pl.cdiv(T, tc)
    tp = nt * tc
    unroll = max(1, min(unroll, tc))

    def pad2(w, r_to, c_to):
        r, c = w.shape
        return jnp.pad(w.astype(f32), ((0, r_to - r), (0, c_to - c)))

    def pad_vec(b, n_to):
        return jnp.pad(b.astype(f32), (0, n_to - b.shape[0]))

    # ---- hoisted input projection with gate biases folded in --------------
    # gx[t] = [ x_t V2^T + b_W2 | x_t V3^T + b_W3 | x_t V1^T + b_V1 ]
    wx = jnp.concatenate([pad2(v2_w, hp, n_inp).T,
                          pad2(v3_w, hp, n_inp).T,
                          pad2(v1_w, hp, n_inp).T], axis=1)          # (I, 3hp)
    bx = jnp.concatenate([pad_vec(w2_b, hp), pad_vec(w3_b, hp),
                          pad_vec(v1_b, hp)]).reshape(1, 3 * hp)     # (1, 3hp)
    xb = jnp.pad(x.astype(f32), ((0, bp - B), (0, 0), (0, 0)))       # (bp,T,I)
    x_tm = jnp.transpose(xb, (1, 0, 2)).reshape(T * bp, n_inp)
    gx = (x_tm @ wx + bx).reshape(T, bp, 3 * hp)
    gx = jnp.pad(gx, ((0, tp - T), (0, 0), (0, 0)))   # time pad, masked in-kernel

    # ---- recurrent / readout weights: pre-transposed, padded, fused -------
    w_zr = jnp.concatenate([pad2(w2_w, hp, hp).T,
                            pad2(w3_w, hp, hp).T], axis=1).astype(mxu_dtype)
    w1_t = pad2(w1_w, hp, hp).T.astype(mxu_dtype)                    # (hp, hp)
    w_out = pad2(wout_w, op, hp).T.astype(mxu_dtype)                 # (hp, op)
    # Padded output lanes get a huge negative bias -> exp underflows to 0, so
    # the in-kernel softmax normalizes over the real classes only.
    b_out = jnp.concatenate([wout_b.astype(f32),
                             jnp.full((op - O,), -1e30, f32)]).reshape(1, op)

    # ---- grid / specs ------------------------------------------------------
    grid = (nb, nt)
    in_specs = [
        pl.BlockSpec((tc, bb, 3 * hp), lambda b, t: (t, b, 0)),   # gx chunk
        pl.BlockSpec((hp, 2 * hp), lambda b, t: (0, 0)),          # [W2^T|W3^T]
        pl.BlockSpec((hp, hp), lambda b, t: (0, 0)),              # W1^T
        pl.BlockSpec((hp, op), lambda b, t: (0, 0)),              # Wout^T
        pl.BlockSpec((1, op), lambda b, t: (0, 0)),               # b_out
    ]
    out_specs = pl.BlockSpec((bb, op), lambda b, t: (b, 0))

    # Explicit VMEM budget (double-buffered gx chunk + resident weights +
    # hidden scratch + output block) so v7x's 64 MiB keeps a 2-deep pipeline.
    esize = jnp.dtype(mxu_dtype).itemsize
    vmem_needed = (2 * tc * bb * 3 * hp * 4
                   + 2 * (hp * 2 * hp + hp * hp + hp * op) * esize
                   + 2 * op * 4
                   + bb * hp * 4
                   + 2 * bb * op * 4)
    vmem_limit = int(min(max(2 * vmem_needed, 16 << 20), 100 << 20))

    kernel = functools.partial(_gru_dfa_kernel, hp=hp, time_chunk=tc,
                               t_actual=T, unroll=unroll, mxu_dtype=mxu_dtype)

    out = pl.pallas_call(
        kernel,
        out_shape=jax.ShapeDtypeStruct((bp, op), jnp.float32),
        grid_spec=pltpu.PrefetchScalarGridSpec(
            num_scalar_prefetch=0,
            grid=grid,
            in_specs=in_specs,
            out_specs=out_specs,
            scratch_shapes=[pltpu.VMEM((bb, hp), jnp.float32)]),
        compiler_params=pltpu.CompilerParams(
            dimension_semantics=("parallel", "arbitrary"),
            vmem_limit_bytes=vmem_limit),
    )(gx, w_zr, w1_t, w_out, b_out)

    return out[:B, :O]


def gru_dfa_reference(x, w1_w, v1_w, v1_b, w2_w, w2_b, v2_w, w3_w, w3_b, v3_w,
                      wout_w, wout_b):
    """Pure-JAX reference matching the PyTorch GRU_DFA.forward (y=None)."""
    B, T, _ = x.shape
    H = w1_w.shape[0]
    h0 = jnp.zeros((B, H), jnp.float32)

    def step(hidden, x_t):
        z = jax.nn.sigmoid(hidden @ w2_w.T + w2_b + x_t @ v2_w.T)
        r = jax.nn.sigmoid(hidden @ w3_w.T + w3_b + x_t @ v3_w.T)
        h = jnp.tanh(x_t @ v1_w.T + v1_b + (hidden * r) @ w1_w.T)
        hidden = (1.0 - z) * h + z * hidden
        return hidden, None

    hidden, _ = jax.lax.scan(step, h0, jnp.transpose(x, (1, 0, 2)))
    return jax.nn.softmax(hidden @ wout_w.T + wout_b, axis=-1)


if __name__ == "__main__":
    B, T, n_inp, n_hid, n_out = 2, 8, 16, 32, 8

    key = jax.random.PRNGKey(0)
    ks = jax.random.split(key, 12)
    bh = 1.0 / jnp.sqrt(jnp.float32(n_hid))
    bi = 1.0 / jnp.sqrt(jnp.float32(n_inp))

    x = jax.random.normal(ks[0], (B, T, n_inp), jnp.float32)
    w1_w = jax.random.uniform(ks[1], (n_hid, n_hid), jnp.float32, -bh, bh)   # W1 (no bias)
    v1_w = jax.random.uniform(ks[2], (n_hid, n_inp), jnp.float32, -bi, bi)   # V1
    v1_b = jax.random.uniform(ks[3], (n_hid,), jnp.float32, -bi, bi)
    w2_w = jax.random.uniform(ks[4], (n_hid, n_hid), jnp.float32, -bh, bh)   # W2
    w2_b = jax.random.uniform(ks[5], (n_hid,), jnp.float32, -bh, bh)
    v2_w = jax.random.uniform(ks[6], (n_hid, n_inp), jnp.float32, -bi, bi)   # V2 (no bias)
    w3_w = jax.random.uniform(ks[7], (n_hid, n_hid), jnp.float32, -bh, bh)   # W3
    w3_b = jax.random.uniform(ks[8], (n_hid,), jnp.float32, -bh, bh)
    v3_w = jax.random.uniform(ks[9], (n_hid, n_inp), jnp.float32, -bi, bi)   # V3 (no bias)
    wout_w = jax.random.uniform(ks[10], (n_out, n_hid), jnp.float32, -bh, bh)
    wout_b = jax.random.uniform(ks[11], (n_out,), jnp.float32, -bh, bh)

    args = (x, w1_w, v1_w, v1_b, w2_w, w2_b, v2_w, w3_w, w3_b, v3_w,
            wout_w, wout_b)

    # time_chunk=4 -> 2 time chunks at T=8: exercises the chunked pipeline and
    # the pl.when init/finalize of the hidden accumulator across grid steps.
    out = gru_dfa_forward(*args, time_chunk=4, unroll=4)
    out = jax.block_until_ready(out)

    ref = gru_dfa_reference(*args)
    assert out.shape == (B, n_out)
    assert jnp.allclose(out, ref, atol=1e-5, rtol=1e-5)
    # softmax rows should sum to 1
    assert jnp.allclose(jnp.sum(out, axis=-1), jnp.ones((B,)), atol=1e-5)

    print("KERNEL_OK")
</pallas_src>

<mosaic_0001>
module attributes {stable_mosaic.version = 11 : i64} {
  func.func @_gru_dfa_kernel(%arg0: i32, %arg1: i32, %arg2: memref<4x8x384xf32, #tpu.memory_space<vmem>>, %arg3: memref<128x256xf32, #tpu.memory_space<vmem>>, %arg4: memref<128x128xf32, #tpu.memory_space<vmem>>, %arg5: memref<128x128xf32, #tpu.memory_space<vmem>>, %arg6: memref<1x128xf32, #tpu.memory_space<vmem>>, %arg7: memref<8x128xf32, #tpu.memory_space<vmem>>, %arg8: memref<8x128xf32, #tpu.memory_space<vmem>>) attributes {dimension_semantics = [#tpu.dimension_semantics<parallel>, #tpu.dimension_semantics<arbitrary>], iteration_bounds = array<i64: 1, 2>, scalar_prefetch = 0 : i64, scratch_operands = 1 : i64, tpu.core_type = #tpu.core_type<tc>, window_params = [{transform_indices = @transform_0, window_bounds = array<i64: 4, 8, 384>}, {pipeline_mode = #tpu.pipeline_mode<synchronous>, transform_indices = @transform_1, window_bounds = array<i64: 128, 256>}, {pipeline_mode = #tpu.pipeline_mode<synchronous>, transform_indices = @transform_2, window_bounds = array<i64: 128, 128>}, {pipeline_mode = #tpu.pipeline_mode<synchronous>, transform_indices = @transform_3, window_bounds = array<i64: 128, 128>}, {pipeline_mode = #tpu.pipeline_mode<synchronous>, transform_indices = @transform_4, window_bounds = array<i64: 1, 128>}, {transform_indices = @transform_5, window_bounds = array<i64: 8, 128>}]} {
    %c0_i32 = arith.constant 0 : i32
    %0 = arith.cmpi eq, %arg1, %c0_i32 : i32
    %1 = arith.extui %0 : i1 to i32
    %c0_i32_0 = arith.constant 0 : i32
    %2 = arith.cmpi ne, %1, %c0_i32_0 : i32
    scf.if %2 {
      %cst_42 = arith.constant 0.000000e+00 : f32
      %135 = vector.broadcast %cst_42 : f32 to vector<8x128xf32>
      %c0_43 = arith.constant 0 : index
      %c0_44 = arith.constant 0 : index
      %136 = vector.load %arg8[%c0_43, %c0_44] : memref<8x128xf32, #tpu.memory_space<vmem>>, vector<8x128xf32>
      tpu.vector_store %arg8[%c0_43, %c0_44], %135 {strides = array<i32>} : memref<8x128xf32, #tpu.memory_space<vmem>>, vector<8x128xf32>,
    } else {
    }
    %c0 = arith.constant 0 : index
    %c0_1 = arith.constant 0 : index
    %3 = vector.load %arg3[%c0, %c0_1] : memref<128x256xf32, #tpu.memory_space<vmem>>, vector<128x256xf32>
    %c0_2 = arith.constant 0 : index
    %c0_3 = arith.constant 0 : index
    %4 = vector.load %arg4[%c0_2, %c0_3] : memref<128x128xf32, #tpu.memory_space<vmem>>, vector<128x128xf32>
    %c4_i32 = arith.constant 4 : i32
    %5 = arith.muli %arg1, %c4_i32 : i32
    %c0_4 = arith.constant 0 : index
    %c0_5 = arith.constant 0 : index
    %6 = vector.load %arg8[%c0_4, %c0_5] : memref<8x128xf32, #tpu.memory_space<vmem>>, vector<8x128xf32>
    %c0_i32_6 = arith.constant 0 : i32
    %7 = arith.index_cast %c0_i32_6 : i32 to index
    %c0_7 = arith.constant 0 : index
    %c0_8 = arith.constant 0 : index
    %8 = vector.load %arg2[%7, %c0_7, %c0_8] : memref<4x8x384xf32, #tpu.memory_space<vmem>>, vector<1x8x384xf32>
    %9 = vector.shape_cast %8 : vector<1x8x384xf32> to vector<8x384xf32>
    %cst = arith.constant dense<0.000000e+00> : vector<8x256xf32>
    %10 = tpu.matmul %6, %3, %cst {dimension_numbers = #tpu.dot_dimension_numbers<[1], [0], [0], [1], [0, 0, 1, 1], [], []>} : vector<8x128xf32>, vector<128x256xf32>, vector<8x256xf32> -> vector<8x256xf32>
    %11 = vector.extract_strided_slice %9 {offsets = [0, 0], sizes = [8, 256], strides = [1, 1]} : vector<8x384xf32> to vector<8x256xf32>
    %12 = arith.addf %10, %11 : vector<8x256xf32>
    %13 = vector.extract_strided_slice %12 {offsets = [0, 0], sizes = [8, 128], strides = [1, 1]} : vector<8x256xf32> to vector<8x128xf32>
    %14 = arith.negf %13 : vector<8x128xf32>
    %15 = math.exp %14 : vector<8x128xf32>
    %cst_9 = arith.constant 1.000000e+00 : f32
    %16 = vector.broadcast %cst_9 : f32 to vector<8x128xf32>
    %17 = arith.addf %16, %15 : vector<8x128xf32>
    %18 = arith.divf %16, %17 : vector<8x128xf32>
    %19 = vector.extract_strided_slice %12 {offsets = [0, 128], sizes = [8, 128], strides = [1, 1]} : vector<8x256xf32> to vector<8x128xf32>
    %20 = arith.negf %19 : vector<8x128xf32>
    %21 = math.exp %20 : vector<8x128xf32>
    %cst_10 = arith.constant 1.000000e+00 : f32
    %22 = vector.broadcast %cst_10 : f32 to vector<8x128xf32>
    %23 = arith.addf %22, %21 : vector<8x128xf32>
    %24 = arith.divf %22, %23 : vector<8x128xf32>
    %25 = arith.mulf %6, %24 : vector<8x128xf32>
    %cst_11 = arith.constant dense<0.000000e+00> : vector<8x128xf32>
    %26 = tpu.matmul %25, %4, %cst_11 {dimension_numbers = #tpu.dot_dimension_numbers<[1], [0], [0], [1], [0, 0, 1, 1], [], []>} : vector<8x128xf32>, vector<128x128xf32>, vector<8x128xf32> -> vector<8x128xf32>
    %27 = vector.extract_strided_slice %9 {offsets = [0, 256], sizes = [8, 128], strides = [1, 1]} : vector<8x384xf32> to vector<8x128xf32>
    %28 = arith.addf %26, %27 : vector<8x128xf32>
    %29 = math.tanh %28 : vector<8x128xf32>
    %cst_12 = arith.constant 1.000000e+00 : f32
    %30 = vector.broadcast %cst_12 : f32 to vector<8x128xf32>
    %31 = arith.subf %30, %18 : vector<8x128xf32>
    %32 = arith.mulf %31, %29 : vector<8x128xf32>
    %33 = arith.mulf %18, %6 : vector<8x128xf32>
    %34 = arith.addf %32, %33 : vector<8x128xf32>
    %35 = arith.addi %5, %c0_i32_6 : i32
    %c8_i32 = arith.constant 8 : i32
    %36 = arith.cmpi slt, %35, %c8_i32 : i32
    %37 = arith.select %36, %34, %6 : vector<8x128xf32>
    %c1_i32 = arith.constant 1 : i32
    %38 = arith.index_cast %c1_i32 : i32 to index
    %c0_13 = arith.constant 0 : index
    %c0_14 = arith.constant 0 : index
    %39 = vector.load %arg2[%38, %c0_13, %c0_14] : memref<4x8x384xf32, #tpu.memory_space<vmem>>, vector<1x8x384xf32>
    %40 = vector.shape_cast %39 : vector<1x8x384xf32> to vector<8x384xf32>
    %cst_15 = arith.constant dense<0.000000e+00> : vector<8x256xf32>
    %41 = tpu.matmul %37, %3, %cst_15 {dimension_numbers = #tpu.dot_dimension_numbers<[1], [0], [0], [1], [0, 0, 1, 1], [], []>} : vector<8x128xf32>, vector<128x256xf32>, vector<8x256xf32> -> vector<8x256xf32>
    %42 = vector.extract_strided_slice %40 {offsets = [0, 0], sizes = [8, 256], strides = [1, 1]} : vector<8x384xf32> to vector<8x256xf32>
    %43 = arith.addf %41, %42 : vector<8x256xf32>
    %44 = vector.extract_strided_slice %43 {offsets = [0, 0], sizes = [8, 128], strides = [1, 1]} : vector<8x256xf32> to vector<8x128xf32>
    %45 = arith.negf %44 : vector<8x128xf32>
    %46 = math.exp %45 : vector<8x128xf32>
    %cst_16 = arith.constant 1.000000e+00 : f32
    %47 = vector.broadcast %cst_16 : f32 to vector<8x128xf32>
    %48 = arith.addf %47, %46 : vector<8x128xf32>
    %49 = arith.divf %47, %48 : vector<8x128xf32>
    %50 = vector.extract_strided_slice %43 {offsets = [0, 128], sizes = [8, 128], strides = [1, 1]} : vector<8x256xf32> to vector<8x128xf32>
    %51 = arith.negf %50 : vector<8x128xf32>
    %52 = math.exp %51 : vector<8x128xf32>
    %cst_17 = arith.constant 1.000000e+00 : f32
    %53 = vector.broadcast %cst_17 : f32 to vector<8x128xf32>
    %54 = arith.addf %53, %52 : vector<8x128xf32>
    %55 = arith.divf %53, %54 : vector<8x128xf32>
    %56 = arith.mulf %37, %55 : vector<8x128xf32>
    %cst_18 = arith.constant dense<0.000000e+00> : vector<8x128xf32>
    %57 = tpu.matmul %56, %4, %cst_18 {dimension_numbers = #tpu.dot_dimension_numbers<[1], [0], [0], [1], [0, 0, 1, 1], [], []>} : vector<8x128xf32>, vector<128x128xf32>, vector<8x128xf32> -> vector<8x128xf32>
    %58 = vector.extract_strided_slice %40 {offsets = [0, 256], sizes = [8, 128], strides = [1, 1]} : vector<8x384xf32> to vector<8x128xf32>
    %59 = arith.addf %57, %58 : vector<8x128xf32>
    %60 = math.tanh %59 : vector<8x128xf32>
    %cst_19 = arith.constant 1.000000e+00 : f32
    %61 = vector.broadcast %cst_19 : f32 to vector<8x128xf32>
    %62 = arith.subf %61, %49 : vector<8x128xf32>
    %63 = arith.mulf %62, %60 : vector<8x128xf32>
    %64 = arith.mulf %49, %37 : vector<8x128xf32>
    %65 = arith.addf %63, %64 : vector<8x128xf32>
    %66 = arith.addi %5, %c1_i32 : i32
    %c8_i32_20 = arith.constant 8 : i32
    %67 = arith.cmpi slt, %66, %c8_i32_20 : i32
    %68 = arith.select %67, %65, %37 : vector<8x128xf32>
    %c2_i32 = arith.constant 2 : i32
    %69 = arith.index_cast %c2_i32 : i32 to index
    %c0_21 = arith.constant 0 : index
    %c0_22 = arith.constant 0 : index
    %70 = vector.load %arg2[%69, %c0_21, %c0_22] : memref<4x8x384xf32, #tpu.memory_space<vmem>>, vector<1x8x384xf32>
    %71 = vector.shape_cast %70 : vector<1x8x384xf32> to vector<8x384xf32>
    %cst_23 = arith.constant dense<0.000000e+00> : vector<8x256xf32>
    %72 = tpu.matmul %68, %3, %cst_23 {dimension_numbers = #tpu.dot_dimension_numbers<[1], [0], [0], [1], [0, 0, 1, 1], [], []>} : vector<8x128xf32>, vector<128x256xf32>, vector<8x256xf32> -> vector<8x256xf32>
    %73 = vector.extract_strided_slice %71 {offsets = [0, 0], sizes = [8, 256], strides = [1, 1]} : vector<8x384xf32> to vector<8x256xf32>
    %74 = arith.addf %72, %73 : vector<8x256xf32>
    %75 = vector.extract_strided_slice %74 {offsets = [0, 0], sizes = [8, 128], strides = [1, 1]} : vector<8x256xf32> to vector<8x128xf32>
    %76 = arith.negf %75 : vector<8x128xf32>
    %77 = math.exp %76 : vector<8x128xf32>
    %cst_24 = arith.constant 1.000000e+00 : f32
    %78 = vector.broadcast %cst_24 : f32 to vector<8x128xf32>
    %79 = arith.addf %78, %77 : vector<8x128xf32>
    %80 = arith.divf %78, %79 : vector<8x128xf32>
    %81 = vector.extract_strided_slice %74 {offsets = [0, 128], sizes = [8, 128], strides = [1, 1]} : vector<8x256xf32> to vector<8x128xf32>
    %82 = arith.negf %81 : vector<8x128xf32>
    %83 = math.exp %82 : vector<8x128xf32>
    %cst_25 = arith.constant 1.000000e+00 : f32
    %84 = vector.broadcast %cst_25 : f32 to vector<8x128xf32>
    %85 = arith.addf %84, %83 : vector<8x128xf32>
    %86 = arith.divf %84, %85 : vector<8x128xf32>
    %87 = arith.mulf %68, %86 : vector<8x128xf32>
    %cst_26 = arith.constant dense<0.000000e+00> : vector<8x128xf32>
    %88 = tpu.matmul %87, %4, %cst_26 {dimension_numbers = #tpu.dot_dimension_numbers<[1], [0], [0], [1], [0, 0, 1, 1], [], []>} : vector<8x128xf32>, vector<128x128xf32>, vector<8x128xf32> -> vector<8x128xf32>
    %89 = vector.extract_strided_slice %71 {offsets = [0, 256], sizes = [8, 128], strides = [1, 1]} : vector<8x384xf32> to vector<8x128xf32>
    %90 = arith.addf %88, %89 : vector<8x128xf32>
    %91 = math.tanh %90 : vector<8x128xf32>
    %cst_27 = arith.constant 1.000000e+00 : f32
    %92 = vector.broadcast %cst_27 : f32 to vector<8x128xf32>
    %93 = arith.subf %92, %80 : vector<8x128xf32>
    %94 = arith.mulf %93, %91 : vector<8x128xf32>
    %95 = arith.mulf %80, %68 : vector<8x128xf32>
    %96 = arith.addf %94, %95 : vector<8x128xf32>
    %97 = arith.addi %5, %c2_i32 : i32
    %c8_i32_28 = arith.constant 8 : i32
    %98 = arith.cmpi slt, %97, %c8_i32_28 : i32
    %99 = arith.select %98, %96, %68 : vector<8x128xf32>
    %c3_i32 = arith.constant 3 : i32
    %100 = arith.index_cast %c3_i32 : i32 to index
    %c0_29 = arith.constant 0 : index
    %c0_30 = arith.constant 0 : index
    %101 = vector.load %arg2[%100, %c0_29, %c0_30] : memref<4x8x384xf32, #tpu.memory_space<vmem>>, vector<1x8x384xf32>
    %102 = vector.shape_cast %101 : vector<1x8x384xf32> to vector<8x384xf32>
    %cst_31 = arith.constant dense<0.000000e+00> : vector<8x256xf32>
    %103 = tpu.matmul %99, %3, %cst_31 {dimension_numbers = #tpu.dot_dimension_numbers<[1], [0], [0], [1], [0, 0, 1, 1], [], []>} : vector<8x128xf32>, vector<128x256xf32>, vector<8x256xf32> -> vector<8x256xf32>
    %104 = vector.extract_strided_slice %102 {offsets = [0, 0], sizes = [8, 256], strides = [1, 1]} : vector<8x384xf32> to vector<8x256xf32>
    %105 = arith.addf %103, %104 : vector<8x256xf32>
    %106 = vector.extract_strided_slice %105 {offsets = [0, 0], sizes = [8, 128], strides = [1, 1]} : vector<8x256xf32> to vector<8x128xf32>
    %107 = arith.negf %106 : vector<8x128xf32>
    %108 = math.exp %107 : vector<8x128xf32>
    %cst_32 = arith.constant 1.000000e+00 : f32
    %109 = vector.broadcast %cst_32 : f32 to vector<8x128xf32>
    %110 = arith.addf %109, %108 : vector<8x128xf32>
    %111 = arith.divf %109, %110 : vector<8x128xf32>
    %112 = vector.extract_strided_slice %105 {offsets = [0, 128], sizes = [8, 128], strides = [1, 1]} : vector<8x256xf32> to vector<8x128xf32>
    %113 = arith.negf %112 : vector<8x128xf32>
    %114 = math.exp %113 : vector<8x128xf32>
    %cst_33 = arith.constant 1.000000e+00 : f32
    %115 = vector.broadcast %cst_33 : f32 to vector<8x128xf32>
    %116 = arith.addf %115, %114 : vector<8x128xf32>
    %117 = arith.divf %115, %116 : vector<8x128xf32>
    %118 = arith.mulf %99, %117 : vector<8x128xf32>
    %cst_34 = arith.constant dense<0.000000e+00> : vector<8x128xf32>
    %119 = tpu.matmul %118, %4, %cst_34 {dimension_numbers = #tpu.dot_dimension_numbers<[1], [0], [0], [1], [0, 0, 1, 1], [], []>} : vector<8x128xf32>, vector<128x128xf32>, vector<8x128xf32> -> vector<8x128xf32>
    %120 = vector.extract_strided_slice %102 {offsets = [0, 256], sizes = [8, 128], strides = [1, 1]} : vector<8x384xf32> to vector<8x128xf32>
    %121 = arith.addf %119, %120 : vector<8x128xf32>
    %122 = math.tanh %121 : vector<8x128xf32>
    %cst_35 = arith.constant 1.000000e+00 : f32
    %123 = vector.broadcast %cst_35 : f32 to vector<8x128xf32>
    %124 = arith.subf %123, %111 : vector<8x128xf32>
    %125 = arith.mulf %124, %122 : vector<8x128xf32>
    %126 = arith.mulf %111, %99 : vector<8x128xf32>
    %127 = arith.addf %125, %126 : vector<8x128xf32>
    %128 = arith.addi %5, %c3_i32 : i32
    %c8_i32_36 = arith.constant 8 : i32
    %129 = arith.cmpi slt, %128, %c8_i32_36 : i32
    %130 = arith.select %129, %127, %99 : vector<8x128xf32>
    %c4_i32_37 = arith.constant 4 : i32
    %c0_38 = arith.constant 0 : index
    %c0_39 = arith.constant 0 : index
    %131 = vector.load %arg8[%c0_38, %c0_39] : memref<8x128xf32, #tpu.memory_space<vmem>>, vector<8x128xf32>
    tpu.vector_store %arg8[%c0_38, %c0_39], %130 {strides = array<i32>} : memref<8x128xf32, #tpu.memory_space<vmem>>, vector<8x128xf32>,
    %c1_i32_40 = arith.constant 1 : i32
    %132 = arith.cmpi eq, %arg1, %c1_i32_40 : i32
    %133 = arith.extui %132 : i1 to i32
    %c0_i32_41 = arith.constant 0 : i32
    %134 = arith.cmpi ne, %133, %c0_i32_41 : i32
    scf.if %134 {
      %c0_42 = arith.constant 0 : index
      %c0_43 = arith.constant 0 : index
      %135 = vector.load %arg8[%c0_42, %c0_43] : memref<8x128xf32, #tpu.memory_space<vmem>>, vector<8x128xf32>
      %c0_44 = arith.constant 0 : index
      %c0_45 = arith.constant 0 : index
      %136 = vector.load %arg5[%c0_44, %c0_45] : memref<128x128xf32, #tpu.memory_space<vmem>>, vector<128x128xf32>
      %cst_46 = arith.constant dense<0.000000e+00> : vector<8x128xf32>
      %137 = tpu.matmul %135, %136, %cst_46 {dimension_numbers = #tpu.dot_dimension_numbers<[1], [0], [0], [1], [0, 0, 1, 1], [], []>} : vector<8x128xf32>, vector<128x128xf32>, vector<8x128xf32> -> vector<8x128xf32>
      %c0_47 = arith.constant 0 : index
      %c0_48 = arith.constant 0 : index
      %138 = vector.load %arg6[%c0_47, %c0_48] : memref<1x128xf32, #tpu.memory_space<vmem>>, vector<1x128xf32>
      %139 = vector.broadcast %138 : vector<1x128xf32> to vector<8x128xf32>
      %140 = arith.addf %137, %139 : vector<8x128xf32>
      %cst_49 = arith.constant dense<0xFF800000> : vector<8xf32>
      %141 = vector.multi_reduction <maximumf>, %140, %cst_49 [1] : vector<8x128xf32> to vector<8xf32>
      %142 = vector.shape_cast %141 : vector<8xf32> to vector<8x1xf32>
      %143 = vector.broadcast %142 : vector<8x1xf32> to vector<8x128xf32>
      %144 = arith.subf %140, %143 : vector<8x128xf32>
      %145 = math.exp %144 : vector<8x128xf32>
      %cst_50 = arith.constant dense<0.000000e+00> : vector<8xf32>
      %146 = vector.multi_reduction <add>, %145, %cst_50 [1] : vector<8x128xf32> to vector<8xf32>
      %147 = vector.shape_cast %146 : vector<8xf32> to vector<8x1xf32>
      %148 = tpu.reciprocal %147 : vector<8x1xf32> -> vector<8x1xf32>
      %149 = vector.broadcast %148 : vector<8x1xf32> to vector<8x128xf32>
      %150 = arith.mulf %145, %149 : vector<8x128xf32>
      %c0_51 = arith.constant 0 : index
      %c0_52 = arith.constant 0 : index
      %151 = vector.load %arg7[%c0_51, %c0_52] : memref<8x128xf32, #tpu.memory_space<vmem>>, vector<8x128xf32>
      tpu.vector_store %arg7[%c0_51, %c0_52], %150 {strides = array<i32>} : memref<8x128xf32, #tpu.memory_space<vmem>>, vector<8x128xf32>,
    } else {
    }
    return
  }
  func.func @transform_0(%arg0: i32, %arg1: i32) -> (i32, i32, i32) {
    %c0_i32 = arith.constant 0 : i32
    %c0_i32_0 = arith.constant 0 : i32
    return %arg1, %arg0, %c0_i32 : i32, i32, i32
  }
  func.func @transform_1(%arg0: i32, %arg1: i32) -> (i32, i32) {
    %c0_i32 = arith.constant 0 : i32
    %c0_i32_0 = arith.constant 0 : i32
    %c0_i32_1 = arith.constant 0 : i32
    return %c0_i32, %c0_i32_0 : i32, i32
  }
  func.func @transform_2(%arg0: i32, %arg1: i32) -> (i32, i32) {
    %c0_i32 = arith.constant 0 : i32
    %c0_i32_0 = arith.constant 0 : i32
    %c0_i32_1 = arith.constant 0 : i32
    return %c0_i32, %c0_i32_0 : i32, i32
  }
  func.func @transform_3(%arg0: i32, %arg1: i32) -> (i32, i32) {
    %c0_i32 = arith.constant 0 : i32
    %c0_i32_0 = arith.constant 0 : i32
    %c0_i32_1 = arith.constant 0 : i32
    return %c0_i32, %c0_i32_0 : i32, i32
  }
  func.func @transform_4(%arg0: i32, %arg1: i32) -> (i32, i32) {
    %c0_i32 = arith.constant 0 : i32
    %c0_i32_0 = arith.constant 0 : i32
    %c0_i32_1 = arith.constant 0 : i32
    return %c0_i32, %c0_i32_0 : i32, i32
  }
  func.func @transform_5(%arg0: i32, %arg1: i32) -> (i32, i32) {
    %c0_i32 = arith.constant 0 : i32
    %c0_i32_0 = arith.constant 0 : i32
    return %arg0, %c0_i32 : i32, i32
  }
}

</mosaic_0001>

<bundles_post_ra>
// kernel: tpu_custom_call.1
= control target key start
LH: loop header
LB: loop body
LE: loop exit
PB: predicated region body
PF: predicated region fallthrough
CT: control target
= control target key end

     0   :  { %10 = vsyncpa [#allocation4], 0  ;;  %s2659_s0 = inlined_call_operand.hbm [shape: f32[8,8,384], index: 0, kind: input, shape index: {}]   ;;  %s2660_s1 = inlined_call_operand.hbm [shape: f32[128,256], index: 1, kind: input, shape index: {}]   ;;  %s2661_s2 = inlined_call_operand.hbm [shape: f32[128,128], index: 2, kind: input, shape index: {}]   ;;  %s2662_s3 = inlined_call_operand.hbm [shape: f32[128,128], index: 3, kind: input, shape index: {}]   ;;  %s2663_s4 = inlined_call_operand.vmem [shape: f32[1,128], index: 4, kind: input, shape index: {}]   ;;  %s2664_s5 = inlined_call_operand.hbm [shape: f32[8,128], index: 5, kind: output, shape index: {}]  }
   0x1   :  { %12 = vsyncpa [#allocation4 + $0x1], 0 }
   0x2   :  { %13 = vsyncpa [#allocation7], 0 }
   0x3   :  { %14 = vsyncpa [#allocation10], 0 }
   0x4   :  { %15 = vsyncpa [#allocation5], 0  ;;  %s2189_s18 = smov 0   ;;  %s2191_s19 = smov 0  }
   0x5   :  { %s2193_s20 = smov 0   ;;  %s2195_s21 = smov 0  }
   0x6   :  { %s2197_s22 = smov 0   ;;  %s2199_s23 = smov 0  }
   0x7 LB: > { %s1238_s24 = sadd.s32 4294967295, %s2139_s23   ;;  %p55_p0 = scmp.ne.s32.totalorder %s2123_s19, %s2119_s18  ;;  %s2139_s23 = sphi %s2199_s23, %s21_s23   ;;  %s2135_s22 = sphi %s2197_s22, %s2683_s22   ;;  %s2131_s21 = sphi %s2195_s21, %s2682_s21   ;;  %s2127_s20 = sphi %s2193_s20, %s2681_s20   ;;  %s2123_s19 = sphi %s2191_s19, %s2680_s19   ;;  %s2119_s18 = sphi %s2189_s18, %s2679_s18  }
   0x8   : > { %p2221_p1 = scmp.eq.s32.totalorder %s1238_s24, 0  ;;  %p1239_p2 = scmp.ge.s32.totalorder %s2139_s23, 1 }
   0x9   : > { %p176_p3 = scmp.lt.s32.totalorder %s2139_s23, 3  ;;  %s2141_s28 = smov [#allocation6]  }
   0xa   : > { %s2669_s25 = scalar_select %p2221_p1, 1, 0 }
   0xb   : > { %p2229_p4 = por %p2221_p1, %p55_p0  ;;  %p2233_p5 = pnand %p1239_p2, %p176_p3 }
   0xc   : > { %s188_s29 = sshll.u32 %s2141_s28, 4  ;;  %s2142_s6 = smov [#allocation8]   ;;  %s189_s29 = int_to_ptr.vmem [resolvable:$true] %s188_s29 }
   0xd   : > { %s2670_s26 = scalar_select %p2229_p4, 1, 0 }
   0xe   : > { %s2671_s27 = scalar_select %p2233_p5, 1, 0 }
   0xf   : > { %p1805_p6 = pneg %p2233_p5  ;;  %s201_s7 = sshll.u32 %s2142_s6, 4  ;;  %s2245_s7 = int_to_ptr.vmem [resolvable:$true] %s201_s7 }
  0x10   : > { %s1937_s10 = scalar_lea.hbm %s2660_s1, 4096 }
  0x11   : > { %p2241_p7 = pnand %p1805_p6, %p2221_p1  ;;  %p1938_p8 = scmp.ne.s32.totalorder %s2660_s1, %s1937_s10 }
  0x12   : > { %p1944_p12 = scmp.lt.u32.totalorder %s1937_s10, %s2660_s1 }
  0x13   : > { %p2255_p9 = pneg %p2241_p7 }
  0x15   : > { %p1940_p10 = pnand %p2255_p9, %p1938_p8 }
  0x17   : > { %p1941_p11 = pneg %p1940_p10 }
  0x19   : > { %p1946_p13 = pnand %p1944_p12, %p1941_p11 }
  0x1b   : > { %1949 = shalt.err (!%p1946_p13)
}
  0x1c   : > { %s1950_s16 = scalar_lea.vmem %s189_s29, 4096  ;;  %p1958_p6 = scmp.lt.s32.totalorder %s189_s29, %s189_s29 }
  0x1d   : > { %p1951_p0 = scmp.ne.s32.totalorder %s189_s29, %s1950_s16  ;;  %p1959_p1 = scmp.lt.s32.totalorder %s1950_s16, %s1950_s16 }
  0x1f   : > { %p1953_p2 = pnand %p1951_p0, %p2255_p9  ;;  %p1960_p4 = por %p1959_p1, %p1958_p6 }
  0x21   : > { %p1954_p3 = pneg %p1953_p2 }
  0x23   : > { %p1961_p5 = pnand %p1960_p4, %p1954_p3 }
  0x25   : > { %1964 = shalt.err (!%p1961_p5)
}
  0x26   : > { %s2143_s17 = smov 256   ;;  %s2144_s18 = smov 16  }
  0x27   : > { %1808 = dma.hbm_to_vmem [thread:$0]  (!%p2241_p7), %s2660_s1, 4096, %s189_s29, [#allocation7], %s2143_s17, %s2143_s17, %s2144_s18  }
  0x28   : > { %s1965_s10 = scalar_lea.hbm %s2661_s2, 2048 }
  0x29   : > { %p1966_p8 = scmp.ne.s32.totalorder %s2661_s2, %s1965_s10  ;;  %p1972_p5 = scmp.lt.u32.totalorder %s1965_s10, %s2661_s2 }
  0x2b   : > { %p1968_p1 = pnand %p1966_p8, %p2255_p9 }
  0x2d   : > { %p1969_p4 = pneg %p1968_p1 }
  0x2f   : > { %p1974_p10 = pnand %p1972_p5, %p1969_p4 }
  0x31   : > { %1977 = shalt.err (!%p1974_p10)
}
  0x32   : > { %s1978_s29 = scalar_lea.vmem %s2245_s7, 2048  ;;  %p1986_p0 = scmp.lt.s32.totalorder %s2245_s7, %s2245_s7 }
  0x33   : > { %p1979_p11 = scmp.ne.s32.totalorder %s2245_s7, %s1978_s29  ;;  %p1987_p2 = scmp.lt.s32.totalorder %s1978_s29, %s1978_s29 }
  0x35   : > { %p1981_p12 = pnand %p1979_p11, %p2255_p9  ;;  %p1988_p3 = por %p1987_p2, %p1986_p0 }
  0x37   : > { %p1982_p13 = pneg %p1981_p12 }
  0x39   : > { %p1989_p6 = pnand %p1988_p3, %p1982_p13 }
  0x3b   : > { %1992 = shalt.err (!%p1989_p6)
}
  0x3c   : > { %s2145_s16 = smov 128   ;;  %s2146_s17 = smov 8  }
  0x3d   : > { %1811 = dma.hbm_to_vmem [thread:$0]  (!%p2241_p7), %s2661_s2, 2048, %s2245_s7, [#allocation7], %s2145_s16, %s2145_s16, %s2146_s17  }
  0x3e   : > { %s2147_s6 = smov [#allocation9]   ;;  %s1993_s11 = scalar_lea.hbm %s2662_s3, 2048 }
  0x3f   : > { %s214_s8 = sshll.u32 %s2147_s6, 4  ;;  %p1994_p8 = scmp.ne.s32.totalorder %s2662_s3, %s1993_s11  ;;  %s215_s8 = int_to_ptr.vmem [resolvable:$true] %s214_s8 }
  0x40   : > { %p2000_p5 = scmp.lt.u32.totalorder %s1993_s11, %s2662_s3 }
  0x41   : > { %p1996_p1 = pnand %p1994_p8, %p2255_p9 }
  0x43   : > { %p1997_p4 = pneg %p1996_p1 }
  0x45   : > { %p2002_p10 = pnand %p2000_p5, %p1997_p4 }
  0x47   : > { %2005 = shalt.err (!%p2002_p10)
}
  0x48   : > { %s2006_s7 = scalar_lea.vmem %s215_s8, 2048  ;;  %p2014_p0 = scmp.lt.s32.totalorder %s215_s8, %s215_s8 }
  0x49   : > { %p2007_p11 = scmp.ne.s32.totalorder %s215_s8, %s2006_s7  ;;  %p2015_p2 = scmp.lt.s32.totalorder %s2006_s7, %s2006_s7 }
  0x4b   : > { %p2009_p12 = pnand %p2007_p11, %p2255_p9  ;;  %p2016_p3 = por %p2015_p2, %p2014_p0 }
  0x4d   : > { %p2010_p13 = pneg %p2009_p12 }
  0x4f   : > { %p2017_p6 = pnand %p2016_p3, %p2010_p13 }
  0x51   : > { %2020 = shalt.err (!%p2017_p6)
}
  0x52   : > { %1814 = dma.hbm_to_vmem [thread:$0]  (!%p2241_p7), %s2662_s3, 2048, %s215_s8, [#allocation10], %s2145_s16, %s2145_s16, %s2146_s17  }
  0x53   : > { %s30_s13 = sadd.s32 1, %s2135_s22  ;;  %s42_s6 = sadd.s32 1, %s2127_s20 }
  0x54   : > { %p31_p9 = scmp.ge.s32.totalorder %s30_s13, 2  ;;  %p49_p8 = scmp.ne.s32.totalorder %s2127_s20, %s2123_s19 }
  0x55   : > { %p50_p1 = scmp.eq.s32.totalorder %s2139_s23, 0  ;;  %p1822_p5 = scmp.lt.s32.totalorder %s2139_s23, 2 }
  0x56   : > { %s2685_s13 = smov (%p31_p9, %s30_s13), 0  ;;  %s231_s9 = sand.u32 1, %s2127_s20  }
  0x57   : > { %p51_p4 = por %p50_p1, %p49_p8  ;;  %s37_s30 = ssub.s32 %s2135_s22, %s2685_s13 }
  0x58   : > { %p40_p10 = scmp.eq.s32.totalorder %s37_s30, 0  ;;  %s1784_s10 = smul.u32 96, %s231_s9 }
  0x59   : > { %p2323_p11 = pnand %p1822_p5, %p51_p4  ;;  %s1785_s17 = smul.u32 1536, %s2135_s22 }
  0x5a   : > { %s2328_s16 = scalar_select %p40_p10, %s2127_s20, %s42_s6  }
  0x5b   : > { %s235_s8 = scalar_lea.vmem [#allocation3], %s1784_s10  ;;  %s2334_s29 = scalar_lea.hbm %s2659_s0, %s1785_s17 }
  0x5c   : > { %s245_s12 = sshll.u32 %s235_s8, 4  ;;  %s2338_s7 = scalar_lea.sflag [#allocation4], %s231_s9  ;;  %s2336_s12 = int_to_ptr.vmem [resolvable:$true] %s245_s12 }
  0x5d   : > { %s2021_s18 = scalar_lea.hbm %s2334_s29, 1536  ;;  %p2023_p12 = pneg %p2323_p11 }
  0x5e   : > { %p2022_p7 = scmp.ne.s32.totalorder %s2334_s29, %s2021_s18  ;;  %s2026_s30 = scalar_lea.hbm %s2659_s0, 3072 }
  0x5f   : > { %p2027_p2 = scmp.lt.u32.totalorder %s2334_s29, %s2659_s0  ;;  %p2028_p3 = scmp.lt.u32.totalorder %s2026_s30, %s2021_s18 }
  0x60   : > { %p2024_p13 = pnand %p2023_p12, %p2022_p7  ;;  %p2030_p9 = scmp.lt.u32.totalorder %s2021_s18, %s2334_s29 }
  0x61   : > { %p2029_p6 = por %p2028_p3, %p2027_p2 }
  0x62   : > { %p2025_p0 = pneg %p2024_p13 }
  0x63   : > { %p2031_p8 = por %p2030_p9, %p2029_p6 }
  0x65   : > { %p2032_p1 = pnand %p2031_p8, %p2025_p0 }
  0x67   : > { %2035 = shalt.err (!%p2032_p1)
}
  0x68   : > { %s2036_s9 = scalar_lea.vmem %s2336_s12, 1536  ;;  %s2148_s8 = smov [#allocation3]  }
  0x69   : > { %p2037_p4 = scmp.ne.s32.totalorder %s2336_s12, %s2036_s9  ;;  %s2041_s14 = sshll.u32 %s2148_s8, 4  ;;  %s2042_s14 = int_to_ptr.vmem [resolvable:$false] %s2041_s14 }
  0x6a   : > { %s2043_s15 = scalar_lea.vmem %s2042_s14, 3072  ;;  %p2044_p7 = scmp.lt.s32.totalorder %s2336_s12, %s2042_s14 }
  0x6b   : > { %p2039_p5 = pnand %p2037_p4, %p2023_p12  ;;  %p2045_p13 = scmp.lt.s32.totalorder %s2043_s15, %s2036_s9 }
  0x6d   : > { %p2040_p10 = pneg %p2039_p5  ;;  %p2046_p2 = por %p2045_p13, %p2044_p7 }
  0x6f   : > { %p2047_p3 = pnand %p2046_p2, %p2040_p10 }
  0x71   : > { %2050 = shalt.err (!%p2047_p3)
}
  0x72   : > { %s2149_s18 = smov 384   ;;  %s2150_s28 = smov 24  }
  0x73   : > { %1818 = dma.hbm_to_vmem [thread:$0]  (!%p2323_p11), %s2334_s29, 1536, %s2336_s12, %s2338_s7, %s2149_s18, %s2149_s18, %s2150_s28  }
  0x74   : > { %p2675_p12 = scmp.ne.s32.totalorder %s2671_s27, 0 }
  0x75   : > { %s259_s6 = sand.u32 (!%p2675_p12), 1, %s2123_s19   ;;  %p2676_p0 = scmp.ne.s32.totalorder (!%p2675_p12), %s2670_s26, 0 }
  0x76   : > { %257 = sbr.rel (%p2675_p12) target bundleno = 2627 (0xa43), region = 40  ;;  %s260_s10 = scalar_lea.sflag (!%p2675_p12), [#allocation4], %s259_s6 }
  0x77   : > { %s1786_s30 = smul.u32 (!%p2675_p12), 96, %s259_s6 }
  0x79   : > { %s2369_s17 = scalar_lea.vmem (!%p2675_p12), [#allocation3], %s1786_s30 }
  0x7d   : > { %2102 = dma.done.wait (%p2676_p0), %s260_s10, 1536  }
  0x7e   : > { %2104 = vsyncadd (%p2676_p0), %s260_s10, 4294965760  ;;  %p2677_p6 = scmp.ne.s32.totalorder %s2669_s25, 0 }
  0x80   : > { %2106 = dma.done.wait (%p2677_p6), [#allocation7], 6144  }
  0x81   : > { %2108 = vsyncadd (%p2677_p6), [#allocation7], 4294961152 }
  0x82   : > { %2110 = dma.done.wait (%p2677_p6), [#allocation10], 2048  }
  0x83   : > { %2112 = vsyncadd (%p2677_p6), [#allocation10], 4294965248  ;;  %p1251_p11 = scmp.ne.s32.totalorder %s2131_s21, 0 }
  0x84   : > { %v2151_v0 = vmov (!%p1251_p11), 0.0  }
  0x85   : > { %301 = sbr.rel (%p1251_p11) target bundleno = 140 (0x8c), region = 60  ;;  %302 = vst [vmem:[#allocation2] sm:$0xff] (!%p1251_p11), %v2151_v0 }
  0x8c PF: > { %v304_v1 = vld [vmem:[#allocation6 + $0x8] sm:$0xff]  ;;  %v306_v2 = vld [vmem:[#allocation6 + $0x18] sm:$0xff]  ;;  %v303_v3 = vld [vmem:[#allocation6] sm:$0xff]  ;;  %v2152_v8 = vmov 0.0   ;;  %v2153_v54 = vmov 0.0|0.0   ;;  %vm2154_vm0 = vmmov 0  }
  0x8d   : > { %v2384_v4 = vpack.c.bf16 %v306_v2, %v304_v1  ;;  %v305_v5 = vld [vmem:[#allocation6 + $0x10] sm:$0xff]  ;;  %v308_v6 = vld [vmem:[#allocation6 + $0x28] sm:$0xff]  ;;  %v310_v7 = vld [vmem:[#allocation6 + $0x38] sm:$0xff]  ;;  %420 = vmatprep.mubr.f32.mxu0 %v2152_v8  ;;  %1568 = vmatprep.subr.bf16.mxu1 %v2153_v54  ;;  %s2512_s25 = sshll.u32 %s2131_s21, 2  ;;  %p1270_p5 = scmp.ne.s32.totalorder %s2131_s21, 1 }
  0x8e   : > { %v2387_v9 = vpack.c.bf16 %v305_v5, %v303_v3  ;;  %v2389_v10 = vpack.c.bf16 %v310_v7, %v308_v6  ;;  %v307_v11 = vld [vmem:[#allocation6 + $0x20] sm:$0xff]  ;;  %v309_v12 = vld [vmem:[#allocation6 + $0x30] sm:$0xff]  ;;  %v312_v13 = vld [vmem:[#allocation6 + $0x48] sm:$0xff]  ;;  %1393 = vmatprep.mubr.msk.f32.mxu1 %vm2154_vm0, %v2152_v8  ;;  %p515_p9 = scmp.lt.s32.totalorder %s2512_s25, 8  ;;  %s683_s27 = sadd.s32 1, %s2512_s25  ;;  %vm2156_vm5 = vmmov (!%p1270_p5), 0  }
  0x8f   : > { %1537 = vmatprep.subr.bf16.mxu0 %v2384_v4  ;;  %v314_v14 = vld [vmem:[#allocation6 + $0x58] sm:$0xff]  ;;  %v2393_v15 = vpack.c.bf16 %v309_v12, %v307_v11  ;;  %v311_v17 = vld [vmem:[#allocation6 + $0x40] sm:$0xff]  ;;  %v313_v18 = vld [vmem:[#allocation6 + $0x50] sm:$0xff]  ;;  %p684_p8 = scmp.lt.s32.totalorder %s683_s27, 8  ;;  %s852_s12 = sadd.s32 2, %s2512_s25 }
  0x90   : > { %1539 = vmatpush1.bf16.msra.mxu0 %v2387_v9  ;;  %v2396_v16 = vpack.c.bf16 %v314_v14, %v312_v13  ;;  %v316_v19 = vld [vmem:[#allocation6 + $0x68] sm:$0xff]  ;;  %v318_v20 = vld [vmem:[#allocation6 + $0x78] sm:$0xff]  ;;  %v2399_v21 = vpack.c.bf16 %v313_v18, %v311_v17  ;;  %v315_v23 = vld [vmem:[#allocation6 + $0x60] sm:$0xff]  ;;  %s516_s26 = scalar_select %p515_p9, 1, 0 }
  0x91   : > { %1541 = vmatprep.subr.bf16.mxu0 %v2389_v10  ;;  %v2402_v22 = vpack.c.bf16 %v318_v20, %v316_v19  ;;  %v317_v24 = vld [vmem:[#allocation6 + $0x70] sm:$0xff]  ;;  %v320_v25 = vld [vmem:[#allocation6 + $0x88] sm:$0xff]  ;;  %v322_v26 = vld [vmem:[#allocation6 + $0x98] sm:$0xff]  ;;  %s685_s11 = scalar_select %p684_p8, 1, 0 }
  0x92   : > { %v2405_v27 = vpack.c.bf16 %v317_v24, %v315_v23  ;;  %v2408_v28 = vpack.c.bf16 %v322_v26, %v320_v25  ;;  %v319_v29 = vld [vmem:[#allocation6 + $0x80] sm:$0xff]  ;;  %v321_v30 = vld [vmem:[#allocation6 + $0x90] sm:$0xff]  ;;  %v324_v31 = vld [vmem:[#allocation6 + $0xa8] sm:$0xff]  ;;  %p853_p1 = scmp.lt.s32.totalorder %s852_s12, 8  ;;  %s1021_s7 = sadd.s32 3, %s2512_s25 }
  0x93   : > { %v326_v32 = vld [vmem:[#allocation6 + $0xb8] sm:$0xff]  ;;  %v2411_v33 = vpack.c.bf16 %v321_v30, %v319_v29  ;;  %v323_v35 = vld [vmem:[#allocation6 + $0xa0] sm:$0xff]  ;;  %v325_v36 = vld [vmem:[#allocation6 + $0xb0] sm:$0xff]  ;;  %p1022_p4 = scmp.lt.s32.totalorder %s1021_s7, 8 }
  0x94   : > { %1543 = vmatpush1.bf16.msra.mxu0 %v2393_v15  ;;  %v2414_v34 = vpack.c.bf16 %v326_v32, %v324_v31  ;;  %v328_v37 = vld [vmem:[#allocation6 + $0xc8] sm:$0xff]  ;;  %v330_v38 = vld [vmem:[#allocation6 + $0xd8] sm:$0xff]  ;;  %v2417_v39 = vpack.c.bf16 %v325_v36, %v323_v35  ;;  %v327_v41 = vld [vmem:[#allocation6 + $0xc0] sm:$0xff]  ;;  %s854_s29 = scalar_select %p853_p1, 1, 0 }
  0x95   : > { %1545 = vmatprep.subr.bf16.mxu0 %v2396_v16  ;;  %v2420_v40 = vpack.c.bf16 %v330_v38, %v328_v37  ;;  %v329_v42 = vld [vmem:[#allocation6 + $0xd0] sm:$0xff]  ;;  %v332_v43 = vld [vmem:[#allocation6 + $0xe8] sm:$0xff]  ;;  %v334_v44 = vld [vmem:[#allocation6 + $0xf8] sm:$0xff]  ;;  %s1023_s9 = scalar_select %p1022_p4, 1, 0 }
  0x96   : > { %v2423_v45 = vpack.c.bf16 %v329_v42, %v327_v41  ;;  %v2426_v46 = vpack.c.bf16 %v334_v44, %v332_v43  ;;  %v331_v47 = vld [vmem:[#allocation6 + $0xe0] sm:$0xff]  ;;  %v333_v48 = vld [vmem:[#allocation6 + $0xf0] sm:$0xff]  ;;  %v2433_v50 = vld [vmem:[#allocation2] sm:$0xff] }
  0x97   : > { %v2429_v49 = vpack.c.bf16 %v333_v48, %v331_v47  ;;  %v335_v51 = vld [vmem:[#allocation8] sm:$0xff]  ;;  %v336_v52 = vld [vmem:[#allocation8 + $0x8] sm:$0xff]  ;;  %v337_v55 = vld [vmem:[#allocation8 + $0x10] sm:$0xff]  ;;  %v517_v48 = vstv %s516_s26 }
  0x98   : > { %1547 = vmatpush1.bf16.msra.mxu0 %v2399_v21  ;;  %v2454_v53 = vpack.c.bf16 %v336_v52, %v335_v51  ;;  %v338_v56 = vld [vmem:[#allocation8 + $0x18] sm:$0xff]  ;;  %v339_v58 = vld [vmem:[#allocation8 + $0x20] sm:$0xff]  ;;  %v340_v59 = vld [vmem:[#allocation8 + $0x28] sm:$0xff]  ;;  %vm518_vm1 = vcmp.eq.s32.totalorder %v517_v48, 1 }
  0x99   : > { %1549 = vmatprep.subr.bf16.mxu0 %v2402_v22  ;;  %v2459_v57 = vpack.c.bf16 %v338_v56, %v337_v55  ;;  %v2463_v60 = vpack.c.bf16 %v340_v59, %v339_v58  ;;  %v341_v61 = vld [vmem:[#allocation8 + $0x30] sm:$0xff]  ;;  %v342_v62 = vld [vmem:[#allocation8 + $0x38] sm:$0xff]  ;;  %v343_v0 = vld [vmem:[#allocation8 + $0x40] sm:$0xff] }
  0x9a   : > { %1570 = vmatpush3.bf16.msra.mxu1 %v2454_v53  ;;  %v2467_v63 = vpack.c.bf16 %v342_v62, %v341_v61  ;;  %v344_v1 = vld [vmem:[#allocation8 + $0x48] sm:$0xff]  ;;  %v345_v3 = vld [vmem:[#allocation8 + $0x50] sm:$0xff]  ;;  %v346_v5 = vld [vmem:[#allocation8 + $0x58] sm:$0xff] }
  0x9b   : > { %1571 = vmatprep.subr.bf16.mxu1 %v2153_v54  ;;  %v2471_v2 = vpack.c.bf16 %v344_v1, %v343_v0  ;;  %v2475_v6 = vpack.c.bf16 %v346_v5, %v345_v3  ;;  %v347_v7 = vld [vmem:[#allocation8 + $0x60] sm:$0xff]  ;;  %v348_v11 = vld [vmem:[#allocation8 + $0x68] sm:$0xff]  ;;  %v349_v13 = vld [vmem:[#allocation8 + $0x70] sm:$0xff] }
  0x9c   : > { %1551 = vmatpush1.bf16.msra.mxu0 %v2405_v27  ;;  %v2480_v12 = vpack.c.bf16 %v348_v11, %v347_v7  ;;  %v350_v14 = vld [vmem:[#allocation8 + $0x78] sm:$0xff]  ;;  %v354_v18 = vld [vmem:[%s2369_s17 + $0x8] sm:$0xff]  ;;  %v353_v31 = vld [vmem:[%s2369_s17] sm:$0xff] }
  0x9d   : > { %1553 = vmatprep.subr.bf16.mxu0 %v2408_v28  ;;  %v2484_v17 = vpack.c.bf16 %v350_v14, %v349_v13  ;;  %v355_v38 = vld [vmem:[%s2369_s17 + $0x10] sm:$0xff] }
  0x9e   : > { %1573 = vmatpush3.bf16.msra.mxu1 %v2459_v57 }
  0x9f   : > { %1574 = vmatprep.subr.bf16.mxu1 %v2153_v54 }
  0xa0   : > { %1555 = vmatpush1.bf16.msra.mxu0 %v2411_v33 }
  0xa1   : > { %1557 = vmatprep.subr.bf16.mxu0 %v2414_v34 }
  0xa2   : > { %1576 = vmatpush3.bf16.msra.mxu1 %v2463_v60 }
  0xa3   : > { %1577 = vmatprep.subr.bf16.mxu1 %v2153_v54 }
  0xa4   : > { %1559 = vmatpush1.bf16.msra.mxu0 %v2417_v39 }
  0xa5   : > { %1561 = vmatprep.subr.bf16.mxu0 %v2420_v40 }
  0xa6   : > { %1579 = vmatpush3.bf16.msra.mxu1 %v2467_v63 }
  0xa7   : > { %1580 = vmatprep.subr.bf16.mxu1 %v2153_v54 }
  0xa8   : > { %1563 = vmatpush1.bf16.msra.mxu0 %v2423_v45 }
  0xa9   : > { %1565 = vmatprep.subr.bf16.mxu0 %v2426_v46 }
  0xaa   : > { %1582 = vmatpush3.bf16.msra.mxu1 %v2471_v2 }
  0xab   : > { %1583 = vmatprep.subr.bf16.mxu1 %v2153_v54 }
  0xac   : > { %1567 = vmatpush1.bf16.msra.mxu0 %v2429_v49 }
  0xad   : > { %1593 = vmatprep.subr.bf16.mxu0 %v2384_v4 }
  0xae   : > { %1585 = vmatpush3.bf16.msra.mxu1 %v2475_v6 }
  0xaf   : > { %421 = vmatmul.mubr.f32.vlgmr.msra.gmra.mrb[0].mxu0 %v2433_v50  ;;  %1586 = vmatprep.subr.bf16.mxu1 %v2153_v54 }
  0xb0   : > { %1595 = vmatpush1.bf16.msra.mxu0 %v2387_v9  ;;  %588 = vmatprep.mubr.f32.mxu0 %v2152_v8 }
  0xb1   : > { %1597 = vmatprep.subr.bf16.mxu0 %v2389_v10 }
  0xb2   : > { %1588 = vmatpush3.bf16.msra.mxu1 %v2480_v12 }
  0xb3   : > { %1589 = vmatprep.subr.bf16.mxu1 %v2153_v54 }
  0xb4   : > { %1599 = vmatpush1.bf16.msra.mxu0 %v2393_v15 }
  0xb5   : > { %1601 = vmatprep.subr.bf16.mxu0 %v2396_v16 }
  0xb6   : > { %1591 = vmatpush3.bf16.msra.mxu1 %v2484_v17 }
  0xb7   : > { %1624 = vmatprep.subr.bf16.mxu1 %v2153_v54 }
  0xb8   : > { %1603 = vmatpush1.bf16.msra.mxu0 %v2399_v21 }
  0xb9   : > { %1605 = vmatprep.subr.bf16.mxu0 %v2402_v22 }
  0xbc   : > { %1607 = vmatpush1.bf16.msra.mxu0 %v2405_v27 }
  0xbd   : > { %1609 = vmatprep.subr.bf16.mxu0 %v2408_v28 }
  0xc0   : > { %1611 = vmatpush1.bf16.msra.mxu0 %v2411_v33 }
  0xc1   : > { %1613 = vmatprep.subr.bf16.mxu0 %v2414_v34 }
  0xc4   : > { %1615 = vmatpush1.bf16.msra.mxu0 %v2417_v39 }
  0xc5   : > { %1617 = vmatprep.subr.bf16.mxu0 %v2420_v40 }
  0xc8   : > { %1619 = vmatpush1.bf16.msra.mxu0 %v2423_v45 }
  0xc9   : > { %1621 = vmatprep.subr.bf16.mxu0 %v2426_v46 }
  0xcc   : > { %1623 = vmatpush1.bf16.msra.mxu0 %v2429_v49 }
  0xcd   : > { %1649 = vmatprep.subr.bf16.mxu0 %v2384_v4 }
 0x182   : > { %v422_v19 = vpop.f32.mrb[0].mxu0 }
 0x183   : > { %v424_v20 = vpop.f32.mrb[1].mxu0  ;;  %v423_v32 = vadd.f32 %v422_v19, %v353_v31  ;;  %v1257_v19 = vld [vmem:[%s2369_s17 + $0x28] sm:$0xff] }
 0x184   : > { %v425_v23 = vadd.f32 %v424_v20, %v354_v18 }
 0x185   : > { %v1253_v35 = vmul.f32 -1.442695, %v423_v32 }
 0x186   : > { %v1254_v24 = vmul.f32 -1.442695, %v425_v23 }
 0x188   : > { %1893 = vpow2.f32 %v1254_v24 }
 0x192   : > { %v1894_v25 = vpop.eup %1893 }
 0x193   : > { %v436_v26 = vadd.f32 1.0, %v1894_v25 }
 0x195   : > { %1895 = vrcp.f32 %v436_v26 }
 0x196   : > { %1897 = vpow2.f32 %v1253_v35 }
 0x19f   : > { %v1896_v29 = vpop.eup %1895 }
 0x1a0   : > { %v439_v30 = vmul.f32 %v1896_v29, %v2433_v50  ;;  %v1898_v36 = vpop.eup %1897  ;;  %v686_v29 = vstv %s685_s11 }
 0x1a1   : > { %v430_v37 = vadd.f32 1.0, %v1898_v36  ;;  %vm687_vm2 = vcmp.eq.s32.totalorder %v686_v29, 1  ;;  %v2157_v29 = vmov (!%p1270_p5), 0.0  }
 0x1a2   : > { %1394 = vmatmul.mubr.f32.vlgmr.msra.gmra.mrb[0].mxu1 %v439_v30 }
 0x1a3   : > { %1626 = vmatpush3.bf16.msra.mxu1 %v2454_v53  ;;  %1428 = vmatprep.mubr.msk.f32.mxu1 %vm2154_vm0, %v2152_v8  ;;  %1899 = vrcp.f32 %v430_v37 }
 0x1a4   : > { %1627 = vmatprep.subr.bf16.mxu1 %v2153_v54 }
 0x1a7   : > { %1629 = vmatpush3.bf16.msra.mxu1 %v2459_v57 }
 0x1a8   : > { %1630 = vmatprep.subr.bf16.mxu1 %v2153_v54 }
 0x1ab   : > { %1632 = vmatpush3.bf16.msra.mxu1 %v2463_v60 }
 0x1ac   : > { %1633 = vmatprep.subr.bf16.mxu1 %v2153_v54 }
 0x1ad   : > { %v1900_v44 = vpop.eup %1899 }
 0x1ae   : > { %v511_v47 = vsub.f32 1.0, %v1900_v44  ;;  %v513_v55 = vmul.f32 %v1900_v44, %v2433_v50 }
 0x1af   : > { %1635 = vmatpush3.bf16.msra.mxu1 %v2467_v63 }
 0x1b0   : > { %1636 = vmatprep.subr.bf16.mxu1 %v2153_v54 }
 0x1b3   : > { %1638 = vmatpush3.bf16.msra.mxu1 %v2471_v2 }
 0x1b4   : > { %1639 = vmatprep.subr.bf16.mxu1 %v2153_v54 }
 0x1b7   : > { %1641 = vmatpush3.bf16.msra.mxu1 %v2475_v6 }
 0x1b8   : > { %1642 = vmatprep.subr.bf16.mxu1 %v2153_v54 }
 0x1bb   : > { %1644 = vmatpush3.bf16.msra.mxu1 %v2480_v12 }
 0x1bc   : > { %1645 = vmatprep.subr.bf16.mxu1 %v2153_v54 }
 0x1bf   : > { %1647 = vmatpush3.bf16.msra.mxu1 %v2484_v17 }
 0x1c0   : > { %1680 = vmatprep.subr.bf16.mxu1 %v2153_v54 }
 0x275   : > { %v506_v41 = vpop.f32.mrb[0].mxu1 }
 0x276   : > { %v507_v42 = vadd.f32 %v506_v41, %v355_v38  ;;  %v1395_v43 = vpop.f32.mrb[1].mxu1  ;;  %v1266_v38 = vld [vmem:[%s2369_s17 + $0x50] sm:$0xff] }
 0x278   : > { %1901 = vtanh.f32 %v507_v42 }
 0x282   : > { %v1902_v51 = vpop.eup %1901 }
 0x283   : > { %v512_v52 = vmul.f32 %v1902_v51, %v511_v47 }
 0x285   : > { %v514_v56 = vadd.f32 %v513_v55, %v512_v52  ;;  %v1265_v55 = vld [vmem:[%s2369_s17 + $0x48] sm:$0xff] }
 0x287   : > { %v2517_v58 = vsel %vm518_vm1, %v514_v56, %v2433_v50  ;;  %v1256_v50 = vld [vmem:[%s2369_s17 + $0x20] sm:$0xff] }
 0x288   : > { %589 = vmatmul.mubr.f32.vlgmr.msra.gmra.mrb[2].mxu0 %v2517_v58 }
 0x289   : > { %1651 = vmatpush1.bf16.msra.mxu0 %v2387_v9  ;;  %757 = vmatprep.mubr.f32.mxu0 %v2152_v8 }
 0x28a   : > { %1653 = vmatprep.subr.bf16.mxu0 %v2389_v10 }
 0x28d   : > { %1655 = vmatpush1.bf16.msra.mxu0 %v2393_v15 }
 0x28e   : > { %1657 = vmatprep.subr.bf16.mxu0 %v2396_v16 }
 0x291   : > { %1659 = vmatpush1.bf16.msra.mxu0 %v2399_v21 }
 0x292   : > { %1661 = vmatprep.subr.bf16.mxu0 %v2402_v22 }
 0x295   : > { %1663 = vmatpush1.bf16.msra.mxu0 %v2405_v27 }
 0x296   : > { %1665 = vmatprep.subr.bf16.mxu0 %v2408_v28 }
 0x299   : > { %1667 = vmatpush1.bf16.msra.mxu0 %v2411_v33 }
 0x29a   : > { %1669 = vmatprep.subr.bf16.mxu0 %v2414_v34 }
 0x29d   : > { %1671 = vmatpush1.bf16.msra.mxu0 %v2417_v39 }
 0x29e   : > { %1673 = vmatprep.subr.bf16.mxu0 %v2420_v40 }
 0x2a1   : > { %1675 = vmatpush1.bf16.msra.mxu0 %v2423_v45 }
 0x2a2   : > { %1677 = vmatprep.subr.bf16.mxu0 %v2426_v46 }
 0x2a5   : > { %1679 = vmatpush1.bf16.msra.mxu0 %v2429_v49 }
 0x2a6   : > { %1705 = vmatprep.subr.bf16.mxu0 %v2384_v4  ;;  %v1255_v4 = vld [vmem:[%s2369_s17 + $0x18] sm:$0xff] }
 0x35b   : > { %v590_v59 = vpop.f32.mrb[2].mxu0 }
 0x35c   : > { %v592_v61 = vpop.f32.mrb[3].mxu0  ;;  %v591_v11 = vadd.f32 %v1255_v4, %v590_v59 }
 0x35d   : > { %v593_v62 = vadd.f32 %v1256_v50, %v592_v61  ;;  %v1267_v61 = vld [vmem:[%s2369_s17 + $0x58] sm:$0xff] }
 0x35e   : > { %v1258_v13 = vmul.f32 -1.442695, %v591_v11 }
 0x35f   : > { %v1259_v0 = vmul.f32 -1.442695, %v593_v62 }
 0x361   : > { %1903 = vpow2.f32 %v1259_v0 }
 0x36b   : > { %v1904_v1 = vpop.eup %1903 }
 0x36c   : > { %v604_v3 = vadd.f32 1.0, %v1904_v1 }
 0x36e   : > { %1905 = vrcp.f32 %v604_v3 }
 0x36f   : > { %1907 = vpow2.f32 %v1258_v13 }
 0x378   : > { %v1906_v5 = vpop.eup %1905 }
 0x379   : > { %v607_v7 = vmul.f32 %v1906_v5, %v2517_v58  ;;  %v1908_v14 = vpop.eup %1907  ;;  %v1024_v5 = vstv %s1023_s9 }
 0x37a   : > { %v598_v18 = vadd.f32 1.0, %v1908_v14  ;;  %vm1025_vm4 = vcmp.eq.s32.totalorder %v1024_v5, 1 }
 0x37b   : > { %1429 = vmatmul.mubr.f32.vlgmr.msra.gmra.mrb[2].mxu1 %v607_v7 }
 0x37c   : > { %1682 = vmatpush3.bf16.msra.mxu1 %v2454_v53  ;;  %1463 = vmatprep.mubr.msk.f32.mxu1 %vm2154_vm0, %v2152_v8  ;;  %1909 = vrcp.f32 %v598_v18 }
 0x37d   : > { %1683 = vmatprep.subr.bf16.mxu1 %v2153_v54 }
 0x380   : > { %1685 = vmatpush3.bf16.msra.mxu1 %v2459_v57 }
 0x381   : > { %1686 = vmatprep.subr.bf16.mxu1 %v2153_v54 }
 0x384   : > { %1688 = vmatpush3.bf16.msra.mxu1 %v2463_v60 }
 0x385   : > { %1689 = vmatprep.subr.bf16.mxu1 %v2153_v54 }
 0x386   : > { %v1910_v25 = vpop.eup %1909 }
 0x387   : > { %v679_v26 = vsub.f32 1.0, %v1910_v25  ;;  %v681_v32 = vmul.f32 %v1910_v25, %v2517_v58 }
 0x388   : > { %1691 = vmatpush3.bf16.msra.mxu1 %v2467_v63 }
 0x389   : > { %1692 = vmatprep.subr.bf16.mxu1 %v2153_v54 }
 0x38c   : > { %1694 = vmatpush3.bf16.msra.mxu1 %v2471_v2 }
 0x38d   : > { %1695 = vmatprep.subr.bf16.mxu1 %v2153_v54 }
 0x390   : > { %1697 = vmatpush3.bf16.msra.mxu1 %v2475_v6 }
 0x391   : > { %1698 = vmatprep.subr.bf16.mxu1 %v2153_v54 }
 0x394   : > { %1700 = vmatpush3.bf16.msra.mxu1 %v2480_v12 }
 0x395   : > { %1701 = vmatprep.subr.bf16.mxu1 %v2153_v54 }
 0x398   : > { %1703 = vmatpush3.bf16.msra.mxu1 %v2484_v17 }
 0x399   : > { %1736 = vmatprep.subr.bf16.mxu1 %v2153_v54 }
 0x44e   : > { %v674_v20 = vpop.f32.mrb[2].mxu1 }
 0x44f   : > { %v675_v23 = vadd.f32 %v1257_v19, %v674_v20  ;;  %v1430_v24 = vpop.f32.mrb[3].mxu1  ;;  %v1033_v19 = vld [vmem:[#allocation9] sm:$0xff] (!%p1270_p5)  ;;  %v1034_v20 = vld [vmem:[#allocation9 + $0x8] sm:$0xff] (!%p1270_p5) }
 0x450   : > { %v2155_v24 = vmov (!%p1270_p5), 0.0|0.0   ;;  %v1761_v25 = vpack.c.bf16 (!%p1270_p5), %v1034_v20, %v1033_v19 }
 0x451   : > { %1911 = vtanh.f32 %v675_v23  ;;  %v1035_v23 = vld [vmem:[#allocation9 + $0x10] sm:$0xff] (!%p1270_p5) }
 0x45b   : > { %v1912_v30 = vpop.eup %1911 }
 0x45c   : > { %v680_v31 = vmul.f32 %v1912_v30, %v679_v26  ;;  %v1036_v26 = vld [vmem:[#allocation9 + $0x18] sm:$0xff] (!%p1270_p5) }
 0x45d   : > { %v1764_v30 = vpack.c.bf16 (!%p1270_p5), %v1036_v26, %v1035_v23 }
 0x45e   : > { %v682_v35 = vadd.f32 %v681_v32, %v680_v31  ;;  %v1037_v31 = vld [vmem:[#allocation9 + $0x20] sm:$0xff] (!%p1270_p5)  ;;  %v1038_v32 = vld [vmem:[#allocation9 + $0x28] sm:$0xff] (!%p1270_p5) }
 0x460   : > { %v2562_v36 = vsel %vm687_vm2, %v682_v35, %v2517_v58  ;;  %v1767_v35 = vpack.c.bf16 (!%p1270_p5), %v1038_v32, %v1037_v31 }
 0x461   : > { %758 = vmatmul.mubr.f32.vlgmr.msra.gmra.mrb[4].mxu0 %v2562_v36 }
 0x462   : > { %1707 = vmatpush1.bf16.msra.mxu0 %v2387_v9  ;;  %926 = vmatprep.mubr.f32.mxu0 %v2152_v8  ;;  %v1261_v9 = vld [vmem:[%s2369_s17 + $0x38] sm:$0xff] }
 0x463   : > { %1709 = vmatprep.subr.bf16.mxu0 %v2389_v10 }
 0x466   : > { %1711 = vmatpush1.bf16.msra.mxu0 %v2393_v15 }
 0x467   : > { %1713 = vmatprep.subr.bf16.mxu0 %v2396_v16 }
 0x46a   : > { %1715 = vmatpush1.bf16.msra.mxu0 %v2399_v21 }
 0x46b   : > { %1717 = vmatprep.subr.bf16.mxu0 %v2402_v22 }
 0x46e   : > { %1719 = vmatpush1.bf16.msra.mxu0 %v2405_v27 }
 0x46f   : > { %1721 = vmatprep.subr.bf16.mxu0 %v2408_v28 }
 0x472   : > { %1723 = vmatpush1.bf16.msra.mxu0 %v2411_v33 }
 0x473   : > { %1725 = vmatprep.subr.bf16.mxu0 %v2414_v34 }
 0x476   : > { %1727 = vmatpush1.bf16.msra.mxu0 %v2417_v39 }
 0x477   : > { %1729 = vmatprep.subr.bf16.mxu0 %v2420_v40 }
 0x47a   : > { %1731 = vmatpush1.bf16.msra.mxu0 %v2423_v45 }
 0x47b   : > { %1733 = vmatprep.subr.bf16.mxu0 %v2426_v46  ;;  %v1262_v46 = vld [vmem:[%s2369_s17 + $0x40] sm:$0xff] }
 0x47e   : > { %1735 = vmatpush1.bf16.msra.mxu0 %v2429_v49 }
 0x47f   : > { %1760 = vmatprep.subr.bf16.mxu0 (!%p1270_p5), %v2155_v24 }
 0x534   : > { %v759_v10 = vpop.f32.mrb[4].mxu0 }
 0x535   : > { %v761_v15 = vpop.f32.mrb[5].mxu0 }
 0x536   : > { %v762_v16 = vadd.f32 %v1261_v9, %v761_v15  ;;  %v1040_v9 = vld [vmem:[#allocation9 + $0x38] sm:$0xff] (!%p1270_p5)  ;;  %v1041_v15 = vld [vmem:[#allocation9 + $0x40] sm:$0xff] (!%p1270_p5) }
 0x538   : > { %v1264_v21 = vmul.f32 -1.442695, %v762_v16  ;;  %v1042_v16 = vld [vmem:[#allocation9 + $0x48] sm:$0xff] (!%p1270_p5) }
 0x53a   : > { %1913 = vpow2.f32 %v1264_v21  ;;  %v1773_v21 = vpack.c.bf16 (!%p1270_p5), %v1042_v16, %v1041_v15 }
 0x544   : > { %v1914_v22 = vpop.eup %1913 }
 0x545   : > { %v773_v27 = vadd.f32 1.0, %v1914_v22  ;;  %v1043_v22 = vld [vmem:[#allocation9 + $0x50] sm:$0xff] (!%p1270_p5) }
 0x547   : > { %1915 = vrcp.f32 %v773_v27  ;;  %v1044_v27 = vld [vmem:[#allocation9 + $0x58] sm:$0xff] (!%p1270_p5) }
 0x551   : > { %v1916_v28 = vpop.eup %1915 }
 0x552   : > { %v776_v33 = vmul.f32 %v1916_v28, %v2562_v36  ;;  %v1776_v28 = vpack.c.bf16 (!%p1270_p5), %v1044_v27, %v1043_v22 }
 0x554   : > { %1464 = vmatmul.mubr.f32.vlgmr.msra.gmra.mrb[4].mxu1 %v776_v33  ;;  %v1045_v33 = vld [vmem:[#allocation9 + $0x60] sm:$0xff] (!%p1270_p5) }
 0x555   : > { %1738 = vmatpush3.bf16.msra.mxu1 %v2454_v53  ;;  %1498 = vmatprep.mubr.msk.f32.mxu1 %vm2154_vm0, %v2152_v8  ;;  %v1260_v8 = vld [vmem:[%s2369_s17 + $0x30] sm:$0xff] }
 0x556   : > { %1739 = vmatprep.subr.bf16.mxu1 %v2153_v54  ;;  %v760_v34 = vadd.f32 %v1260_v8, %v759_v10  ;;  %v1046_v8 = vld [vmem:[#allocation9 + $0x68] sm:$0xff] (!%p1270_p5) }
 0x558   : > { %v1263_v39 = vmul.f32 -1.442695, %v760_v34  ;;  %v1779_v34 = vpack.c.bf16 (!%p1270_p5), %v1046_v8, %v1045_v33 }
 0x559   : > { %1741 = vmatpush3.bf16.msra.mxu1 %v2459_v57 }
 0x55a   : > { %1742 = vmatprep.subr.bf16.mxu1 %v2153_v54  ;;  %1917 = vpow2.f32 %v1263_v39  ;;  %v1047_v39 = vld [vmem:[#allocation9 + $0x70] sm:$0xff] (!%p1270_p5) }
 0x55d   : > { %1744 = vmatpush3.bf16.msra.mxu1 %v2463_v60 }
 0x55e   : > { %1745 = vmatprep.subr.bf16.mxu1 %v2153_v54 }
 0x561   : > { %1747 = vmatpush3.bf16.msra.mxu1 %v2467_v63  ;;  %v855_v63 = vstv %s854_s29 }
 0x562   : > { %1748 = vmatprep.subr.bf16.mxu1 %v2153_v54  ;;  %vm856_vm3 = vcmp.eq.s32.totalorder %v855_v63, 1 }
 0x564   : > { %v1918_v40 = vpop.eup %1917 }
 0x565   : > { %1750 = vmatpush3.bf16.msra.mxu1 %v2471_v2  ;;  %v767_v45 = vadd.f32 1.0, %v1918_v40  ;;  %v1048_v40 = vld [vmem:[#allocation9 + $0x78] sm:$0xff] (!%p1270_p5) }
 0x566   : > { %1751 = vmatprep.subr.bf16.mxu1 %v2153_v54 }
 0x567   : > { %1919 = vrcp.f32 %v767_v45  ;;  %v1782_v45 = vpack.c.bf16 (!%p1270_p5), %v1048_v40, %v1047_v39 }
 0x569   : > { %1753 = vmatpush3.bf16.msra.mxu1 %v2475_v6 }
 0x56a   : > { %1754 = vmatprep.subr.bf16.mxu1 %v2153_v54 }
 0x56d   : > { %1756 = vmatpush3.bf16.msra.mxu1 %v2480_v12 }
 0x56e   : > { %1757 = vmatprep.subr.bf16.mxu1 %v2153_v54 }
 0x571   : > { %1759 = vmatpush3.bf16.msra.mxu1 %v2484_v17  ;;  %v1920_v60 = vpop.eup %1919 }
 0x572   : > { %v848_v54 = vsub.f32 1.0, %v1920_v60  ;;  %v850_v12 = vmul.f32 %v1920_v60, %v2562_v36 }
 0x627   : > { %v843_v49 = vpop.f32.mrb[4].mxu1 }
 0x628   : > { %v844_v53 = vadd.f32 %v1262_v46, %v843_v49  ;;  %v1465_v57 = vpop.f32.mrb[5].mxu1  ;;  %v1271_v49 = vld [vmem:[%s2663_s4] ss:$0 sm:$0xff] (!%p1270_p5) }
 0x62a   : > { %1921 = vtanh.f32 %v844_v53 }
 0x634   : > { %v1922_v2 = vpop.eup %1921 }
 0x635   : > { %v849_v6 = vmul.f32 %v1922_v2, %v848_v54 }
 0x637   : > { %v851_v17 = vadd.f32 %v850_v12, %v849_v6 }
 0x639   : > { %v857_v37 = vsel %vm856_vm3, %v851_v17, %v2562_v36  ;;  %v1039_v36 = vld [vmem:[#allocation9 + $0x30] sm:$0xff] (!%p1270_p5) }
 0x63a   : > { %927 = vmatmul.mubr.f32.vlgmr.msra.gmra.mrb[6].mxu0 %v857_v37  ;;  %v1770_v10 = vpack.c.bf16 (!%p1270_p5), %v1040_v9, %v1039_v36 }
 0x63b   : > { %1533 = vmatprep.mubr.msk.f32.mxu0 (!%p1270_p5), %vm2156_vm5, %v2157_v29  ;;  %1762 = vmatpush3.bf16.msra.mxu0 (!%p1270_p5), %v1761_v25 }
 0x63c   : > { %1763 = vmatprep.subr.bf16.mxu0 (!%p1270_p5), %v2155_v24 }
 0x63f   : > { %1765 = vmatpush3.bf16.msra.mxu0 (!%p1270_p5), %v1764_v30 }
 0x640   : > { %1766 = vmatprep.subr.bf16.mxu0 (!%p1270_p5), %v2155_v24 }
 0x643   : > { %1768 = vmatpush3.bf16.msra.mxu0 (!%p1270_p5), %v1767_v35 }
 0x644   : > { %1769 = vmatprep.subr.bf16.mxu0 (!%p1270_p5), %v2155_v24 }
 0x647   : > { %1771 = vmatpush3.bf16.msra.mxu0 (!%p1270_p5), %v1770_v10 }
 0x648   : > { %1772 = vmatprep.subr.bf16.mxu0 (!%p1270_p5), %v2155_v24 }
 0x64b   : > { %1774 = vmatpush3.bf16.msra.mxu0 (!%p1270_p5), %v1773_v21 }
 0x64c   : > { %1775 = vmatprep.subr.bf16.mxu0 (!%p1270_p5), %v2155_v24 }
 0x64f   : > { %1777 = vmatpush3.bf16.msra.mxu0 (!%p1270_p5), %v1776_v28 }
 0x650   : > { %1778 = vmatprep.subr.bf16.mxu0 (!%p1270_p5), %v2155_v24 }
 0x653   : > { %1780 = vmatpush3.bf16.msra.mxu0 (!%p1270_p5), %v1779_v34 }
 0x654   : > { %1781 = vmatprep.subr.bf16.mxu0 (!%p1270_p5), %v2155_v24 }
 0x657   : > { %1783 = vmatpush3.bf16.msra.mxu0 (!%p1270_p5), %v1782_v45 }
 0x70d   : > { %v928_v41 = vpop.f32.mrb[6].mxu0 }
 0x70e   : > { %v930_v42 = vpop.f32.mrb[7].mxu0  ;;  %v929_v56 = vadd.f32 %v1265_v55, %v928_v41 }
 0x70f   : > { %v931_v43 = vadd.f32 %v1266_v38, %v930_v42 }
 0x710   : > { %v1268_v58 = vmul.f32 -1.442695, %v929_v56 }
 0x711   : > { %v1269_v44 = vmul.f32 -1.442695, %v931_v43 }
 0x713   : > { %1923 = vpow2.f32 %v1269_v44 }
 0x71d   : > { %v1924_v47 = vpop.eup %1923 }
 0x71e   : > { %v942_v48 = vadd.f32 1.0, %v1924_v47 }
 0x720   : > { %1925 = vrcp.f32 %v942_v48 }
 0x721   : > { %1927 = vpow2.f32 %v1268_v58 }
 0x72a   : > { %v1926_v51 = vpop.eup %1925 }
 0x72b   : > { %v945_v52 = vmul.f32 %v1926_v51, %v857_v37  ;;  %v1928_v50 = vpop.eup %1927 }
 0x72c   : > { %v936_v59 = vadd.f32 1.0, %v1928_v50 }
 0x72d   : > { %1499 = vmatmul.mubr.f32.vlgmr.msra.gmra.mrb[6].mxu1 %v945_v52 }
 0x72e   : > { %1929 = vrcp.f32 %v936_v59 }
 0x738   : > { %v1930_v3 = vpop.eup %1929 }
 0x739   : > { %v1017_v7 = vsub.f32 1.0, %v1930_v3  ;;  %v1019_v11 = vmul.f32 %v1930_v3, %v857_v37 }
 0x800   : > { %v1012_v62 = vpop.f32.mrb[6].mxu1 }
 0x801   : > { %v1013_v0 = vadd.f32 %v1267_v61, %v1012_v62  ;;  %v1500_v1 = vpop.f32.mrb[7].mxu1 }
 0x803   : > { %1931 = vtanh.f32 %v1013_v0 }
 0x80d   : > { %v1932_v4 = vpop.eup %1931  ;;  %1031 = sbr.rel (%p1270_p5) target bundleno = 2602 (0xa2a), region = 64 }
 0x80e   : > { %v1018_v13 = vmul.f32 %v1932_v4, %v1017_v7 }
 0x810   : > { %v1020_v14 = vadd.f32 %v1019_v11, %v1018_v13 }
 0x812   : > { %v1026_v18 = vsel %vm1025_vm4, %v1020_v14, %v857_v37 }
 0x813   : > { %1027 = vst [vmem:[#allocation2] sm:$0xff] %v1026_v18 }
 0x81a   : > { %v1032_v46 = vld [vmem:[#allocation2] sm:$0xff] }
 0x81b   : > { %1534 = vmatmul.mubr.f32.vlgmr.msra.gmra.mrb[0].mxu0 %v1032_v46 }
 0x8ee   : > { %v1122_v53 = vpop.f32.mrb[0].mxu0 }
 0x8ef   : > { %v1123_v57 = vadd.f32 %v1271_v49, %v1122_v53  ;;  %v1535_v60 = vpop.f32.mrb[1].mxu0 }
 0x8f1   : > { %1126 = vmax.xlane.f32.xlu0 %v1123_v57 }
 0x97e   : > { %v1127_v54 = vpop.xlane.xlu0 %1126 }
 0x97f   : > { %v1128_v63 = vsub.f32 %v1123_v57, %v1127_v54 }
 0x981   : > { %v1129_v2 = vmul.f32 1.442695, %v1128_v63 }
 0x983   : > { %1933 = vpow2.f32 %v1129_v2 }
 0x98d   : > { %v1934_v6 = vpop.eup %1933 }
 0x98e   : > { %1131 = vadd.xlane.f32.xlu0 %v1934_v6 }
 0xa1b   : > { %v1132_v12 = vpop.xlane.xlu0 %1131 }
 0xa1c   : > { %1935 = vrcp.f32 %v1132_v12 }
 0xa26   : > { %v1936_v17 = vpop.eup %1935 }
 0xa27   : > { %v1134_v37 = vmul.f32 %v1936_v17, %v1934_v6 }
 0xa29   : > { %1135 = vst [vmem:[#allocation11] sm:$0xff] %v1134_v37 }
 0xa2a PF: > { %p2615_p10 = scmp.eq.s32.totalorder %s1238_s24, 1  ;;  %s2158_s15 = smov [#allocation11]  }
 0xa2b   : > { %s1145_s18 = sshll.u32 %s2158_s15, 4  ;;  %s1146_s18 = int_to_ptr.vmem [resolvable:$true] %s1145_s18 }
 0xa2c   : > { %s2051_s28 = scalar_lea.vmem %s1146_s18, 128  ;;  %p2058_p3 = scmp.lt.s32.totalorder %s1146_s18, %s1146_s18 }
 0xa2d   : > { %p2052_p7 = scmp.ne.s32.totalorder %s1146_s18, %s2051_s28  ;;  %p2059_p12 = scmp.lt.s32.totalorder %s2051_s28, %s2051_s28 }
 0xa2f   : > { %p2053_p13 = pnand %p2052_p7, %p2615_p10  ;;  %p2060_p0 = por %p2059_p12, %p2058_p3 }
 0xa31   : > { %p2054_p2 = pneg %p2053_p13 }
 0xa33   : > { %p2061_p6 = pnand %p2060_p0, %p2054_p2 }
 0xa35   : > { %2064 = shalt.err (!%p2061_p6)
}
 0xa36   : > { %s2065_s24 = scalar_lea.hbm %s2664_s5, 128 }
 0xa37   : > { %p2066_p11 = scmp.ne.s32.totalorder %s2664_s5, %s2065_s24  ;;  %p2071_p1 = scmp.lt.u32.totalorder %s2065_s24, %s2664_s5 }
 0xa39   : > { %p2067_p9 = pnand %p2066_p11, %p2615_p10 }
 0xa3b   : > { %p2068_p8 = pneg %p2067_p9 }
 0xa3d   : > { %p2073_p4 = pnand %p2071_p1, %p2068_p8 }
 0xa3f   : > { %2076 = shalt.err (!%p2073_p4)
}
 0xa40   : > { %1802 = dma.vmem_to_hbm [thread:$0]  (%p2615_p10), %s1146_s18, 128, %s2664_s5, [#allocation5]  }
 0xa41   : > { %2114 = dma.done.wait (%p2615_p10), [#allocation5], 128  }
 0xa42   : > { %2116 = vsyncadd (%p2615_p10), [#allocation5], 4294967168 }
 0xa43 PF: > { %s21_s23 = sadd.s32 1, %s2139_s23   ;;  %s2679_s18 = smov %s2123_s19 }
 0xa44   : > { %p18_p5 = scmp.ge.s32.totalorder %s21_s23, 4   ;;  %s2680_s19 = smov %s2127_s20 }
 0xa45   : > { %s2681_s20 = smov %s2328_s16  ;;  %s2682_s21 = smov %s2135_s22 }
 0xa46   : > { %s2683_s22 = smov %s2685_s13  ;;  %20 = sbr.rel (!%p18_p5) target bundleno = 7 (0x7), region = 101 }
 0xa4d   :  { %1158 = vsyncpa [#allocation4], 1 }
 0xa4e   :  { %1160 = vsyncpa [#allocation4 + $0x1], 1 }
 0xa4f   :  { %1161 = vsyncpa [#allocation7], 1 }
 0xa50   :  { %1162 = vsyncpa [#allocation10], 1 }
 0xa51   :  { %1163 = vsyncpa [#allocation5], 1 }
 0xa52   :  { %1165 = vsyncpa [#allocation5 + $0x1], 1 }

</bundles_post_ra>
